<compile_context>
chip_gen: v7x
topology: tpu7x:2x2x1
jax: 0.10.0
libtpu: 0.0.40
codegen_flags: <defaults>
</compile_context>

<pallas_src>
import functools
import math

import jax
import jax.numpy as jnp
from jax import lax
from jax.experimental import pallas as pl
from jax.experimental.pallas import tpu as pltpu

F32 = jnp.float32
BF16 = jnp.bfloat16


# ------------------------------- helpers ----------------------------------
def _dot_nn(a, b):
    # a: (M, K), b: (K, N) -> (M, N), f32 accumulation on the MXU.
    return lax.dot_general(a, b, (((1,), (0,)), ((), ())),
                           preferred_element_type=F32)


def _fixed1(shape):
    n = len(shape)
    return pl.BlockSpec(shape, lambda b, _n=n: (0,) * _n)


def _fixed2(shape):
    n = len(shape)
    return pl.BlockSpec(shape, lambda t, e, _n=n: (0,) * _n)


def _pick_tm(T):
    """Largest token tile (multiple of 8, <=1024) dividing T that still leaves
    >=2 tiles so the 'parallel' token axis is usable (v7x megacore); else the
    largest divisor / the full T."""
    best = None
    for cand in (1024, 512, 256, 128, 64, 32, 16, 8):
        if T % cand == 0:
            if T // cand >= 2:
                return cand
            if best is None:
                best = cand
    return best if best is not None else T


# --------------------- kernel 1: attention + LayerNorm1 ---------------------
def _attn_ln_kernel(x_ref, wqkv_ref, bqkv_ref, wo_ref, bo_ref, g_ref, b_ref,
                    o_ref, *, nhead, scale):
    x = x_ref[0]                                           # (L, D) f32
    L, D = x.shape
    dh = D // nhead
    xb = x.astype(BF16)
    # Fused QKV projection: one K=D matmul with a pre-transposed (D, 3D) weight.
    qkv = _dot_nn(xb, wqkv_ref[...]) + bqkv_ref[...]       # (L, 3D) f32
    q = qkv[:, :D].reshape(L, nhead, dh).astype(BF16)
    k = qkv[:, D:2 * D].reshape(L, nhead, dh).astype(BF16)
    v = qkv[:, 2 * D:].reshape(L, nhead, dh).astype(BF16)
    # Head-batched attention (no per-head loop, no lane-dim concat).
    s = jnp.einsum('qhd,khd->hqk', q, k,
                   preferred_element_type=F32) * scale     # (H, L, L) f32
    s = s - jnp.max(s, axis=-1, keepdims=True)
    p = jnp.exp(s)
    p = p * pl.reciprocal(jnp.sum(p, axis=-1, keepdims=True), approx=True)
    ctx = jnp.einsum('hqk,khd->qhd', p.astype(BF16), v,
                     preferred_element_type=F32)           # (L, H, dh) f32
    attn = _dot_nn(ctx.reshape(L, D).astype(BF16), wo_ref[...]) + bo_ref[...]
    # Residual + LayerNorm (eps = 1e-5, PyTorch default), all f32.
    s2 = x + attn
    mu = jnp.mean(s2, axis=-1, keepdims=True)
    c = s2 - mu
    var = jnp.mean(c * c, axis=-1, keepdims=True)
    o_ref[0] = c * lax.rsqrt(var + 1e-5) * g_ref[...] + b_ref[...]


def attn_ln_forward(x, lp, nhead):
    B, L, D = x.shape
    ap = lp['attn']
    kern = functools.partial(_attn_ln_kernel, nhead=nhead,
                             scale=1.0 / math.sqrt(D // nhead))
    # TODO(synk): at production sizes block several sequences per grid step to
    # amortize the ~0.35us/step overhead (toy B=2 already gives 2 parallel tiles).
    return pl.pallas_call(
        kern,
        out_shape=jax.ShapeDtypeStruct((B, L, D), F32),
        grid=(B,),
        in_specs=[
            pl.BlockSpec((1, L, D), lambda b: (b, 0, 0)),
            _fixed1((D, 3 * D)), _fixed1((1, 3 * D)),
            _fixed1((D, D)), _fixed1((1, D)),
            _fixed1((1, D)), _fixed1((1, D)),
        ],
        out_specs=pl.BlockSpec((1, L, D), lambda b: (b, 0, 0)),
        compiler_params=pltpu.CompilerParams(
            dimension_semantics=("parallel",)),
    )(x, ap['wqkv_t'], ap['bqkv'], ap['wo_t'], ap['bo'],
      lp['ln1_g'], lp['ln1_b'])


# ------------- kernel 2: gating + top-k MoE FFN + LayerNorm2 ----------------
def _moe_ln_kernel(noise_ref, x_ref, gw1_ref, gw1s_ref, gb1_ref, gw2_ref,
                   gb2_ref, w1_ref, b1_ref, w2_ref, b2_ref, g2_ref, b2ln_ref,
                   o_ref, sc_ref, mk_ref, acc_ref, wsel_ref, hit_ref,
                   *, num_experts, top_k, tau, snr):
    e = pl.program_id(1)                     # top-level only (never inside when)
    x = x_ref[...]                                           # (tm, D) f32
    xb = x.astype(BF16)

    @pl.when(e == 0)
    def _gate_and_init():
        # SNR-aware gating MLP (f32; scores are returned to the caller).
        # Linear(D+1, D) split as an x-part matmul plus a scalar-SNR column.
        h = jnp.maximum(_dot_nn(x, gw1_ref[...]) + gb1_ref[...]
                        + snr * gw1s_ref[...], 0.0)
        logits = _dot_nn(h, gw2_ref[...]) + gb2_ref[...]     # (tm, E)
        # Gumbel-softmax; noise generated outside the kernel with jax.random.
        z = (logits + noise_ref[...]) * (1.0 / tau)
        z = z - jnp.max(z, axis=-1, keepdims=True)
        ez = jnp.exp(z)
        scores = ez / jnp.sum(ez, axis=-1, keepdims=True)    # exact softmax
        sc_ref[...] = scores
        # Strict top-k (ties -> lowest index, torch.topk semantics; no renorm).
        iota = lax.broadcasted_iota(jnp.int32, scores.shape, 1)
        work = scores
        emask = jnp.zeros_like(scores)
        for _ in range(top_k):                               # static, tiny
            m = jnp.max(work, axis=-1, keepdims=True)
            cand = jnp.where(work >= m, iota, num_experts)
            idx = jnp.min(cand, axis=-1, keepdims=True)
            sel = (iota == idx).astype(F32)
            emask = emask + sel
            work = jnp.where(sel > 0.0, -1e30, work)
        mk_ref[...] = emask
        wsel_ref[...] = scores * emask
        acc_ref[...] = jnp.zeros_like(acc_ref)

    # Routing weight of expert `e` per token, and a per-tile "any token routed
    # here?" flag (scores are strictly positive, so selected <=> weight > 0).
    iota_e = lax.broadcasted_iota(jnp.int32, wsel_ref.shape, 1)
    w_e = jnp.sum(jnp.where(iota_e == e, wsel_ref[...], 0.0),
                  axis=-1, keepdims=True)                    # (tm, 1)
    hit_ref[...] = jnp.max(w_e, axis=0, keepdims=True)       # (1, 1)

    @pl.when(hit_ref[0, 0] > 0.0)
    def _expert_contribution():
        # Expert `e` FFN on this token tile (bf16 operands, f32 accumulation).
        # Hidden dim is zero-padded; relu(0)=0 and zero W2 rows keep it exact.
        h = jnp.maximum(_dot_nn(xb, w1_ref[0]) + b1_ref[0], 0.0)     # (tm, Hpad)
        y = _dot_nn(h.astype(BF16), w2_ref[0]) + b2_ref[0]           # (tm, D)
        acc_ref[...] += y * w_e

    @pl.when(e == num_experts - 1)
    def _ln_and_store():
        s = x + acc_ref[...]
        mu = jnp.mean(s, axis=-1, keepdims=True)
        c = s - mu
        var = jnp.mean(c * c, axis=-1, keepdims=True)
        o_ref[...] = c * lax.rsqrt(var + 1e-5) * g2_ref[...] + b2ln_ref[...]


def moe_ln_forward(x1, gumbel, snr, lp, *, tau, top_k, tm):
    T, D = x1.shape
    gp, ep = lp['gate'], lp['experts']
    E = gp['w2_t'].shape[1]
    Hpad = ep['w1t'].shape[2]
    kern = functools.partial(_moe_ln_kernel, num_experts=E, top_k=top_k,
                             tau=tau, snr=float(snr))
    return pl.pallas_call(
        kern,
        out_shape=(jax.ShapeDtypeStruct((T, D), F32),
                   jax.ShapeDtypeStruct((T, E), F32),
                   jax.ShapeDtypeStruct((T, E), F32)),
        grid=(T // tm, E),
        in_specs=[
            pl.BlockSpec((tm, E), lambda t, e: (t, 0)),        # Gumbel noise
            pl.BlockSpec((tm, D), lambda t, e: (t, 0)),        # x1 tokens
            _fixed2((D, D)), _fixed2((1, D)), _fixed2((1, D)),  # gate W1 parts
            _fixed2((D, E)), _fixed2((1, E)),                   # gate W2, b2
            pl.BlockSpec((1, D, Hpad), lambda t, e: (e, 0, 0)),  # expert W1^T
            pl.BlockSpec((1, 1, Hpad), lambda t, e: (e, 0, 0)),  # expert b1
            pl.BlockSpec((1, Hpad, D), lambda t, e: (e, 0, 0)),  # expert W2^T
            pl.BlockSpec((1, 1, D), lambda t, e: (e, 0, 0)),     # expert b2
            _fixed2((1, D)), _fixed2((1, D)),                  # LN2 gamma/beta
        ],
        out_specs=(pl.BlockSpec((tm, D), lambda t, e: (t, 0)),
                   pl.BlockSpec((tm, E), lambda t, e: (t, 0)),
                   pl.BlockSpec((tm, E), lambda t, e: (t, 0))),
        scratch_shapes=[pltpu.VMEM((tm, D), F32),    # MoE accumulator
                        pltpu.VMEM((tm, E), F32),    # selected gate weights
                        pltpu.VMEM((1, 1), F32)],    # per-(tile,expert) hit flag
        compiler_params=pltpu.CompilerParams(
            dimension_semantics=("parallel", "arbitrary"),
            vmem_limit_bytes=48 * 1024 * 1024),      # fits v7x's 64 MiB VMEM
    )(gumbel, x1, gp['w1a_t'], gp['w1s'], gp['b1'], gp['w2_t'], gp['b2'],
      ep['w1t'], ep['b1'], ep['w2t'], ep['b2'], lp['ln2_g'], lp['ln2_b'])


# ----------------------------- model (glue) ---------------------------------
def init_params(key, D, nhead, num_layers, num_experts, hidden_dim):
    # 'arithmetic' expert-size distribution (matches the PyTorch module).
    gap = int(hidden_dim * 0.125)
    a0 = hidden_dim - (num_experts - 1) * gap // 2
    expert_sizes = [max(1, a0 + i * gap) for i in range(num_experts)]
    Hpad = ((max(expert_sizes) + 127) // 128) * 128     # lane-dense hidden dim

    def lin(k, out_f, in_f):
        k1, k2 = jax.random.split(k)
        bound = 1.0 / math.sqrt(in_f)
        w = jax.random.uniform(k1, (out_f, in_f), F32, -bound, bound)
        b = jax.random.uniform(k2, (out_f,), F32, -bound, bound)
        return w, b

    layers = []
    for _ in range(num_layers):
        key, ka, kg, ke = jax.random.split(key, 4)
        kq, kk, kv, ko = jax.random.split(ka, 4)
        wq, bq = lin(kq, D, D)
        wk, bk = lin(kk, D, D)
        wv, bv = lin(kv, D, D)
        wo, bo = lin(ko, D, D)
        # Fused, pre-transposed QKV weight: (D, 3D), bf16 for the MXU.
        attn = dict(
            wqkv_t=jnp.concatenate([wq.T, wk.T, wv.T], axis=1).astype(BF16),
            bqkv=jnp.concatenate([bq, bk, bv]).reshape(1, 3 * D),
            wo_t=wo.T.astype(BF16), bo=bo.reshape(1, D))

        kg1, kg2 = jax.random.split(kg)
        gw1, gb1 = lin(kg1, D, D + 1)            # Linear(D+1 -> D)
        gw2, gb2 = lin(kg2, num_experts, D)      # Linear(D -> E)
        gate = dict(w1a_t=gw1[:, :D].T,              # (D, D) x-part, (in,out)
                    w1s=gw1[:, D].reshape(1, D),     # (1, D) SNR column
                    b1=gb1.reshape(1, D),
                    w2_t=gw2.T,                      # (D, E)
                    b2=gb2.reshape(1, num_experts))

        # Stacked, zero-padded, pre-transposed expert weights. Padding is exact
        # (relu(0)=0, padded W2 rows zero) and survives the bf16 cast exactly.
        w1t = jnp.zeros((num_experts, D, Hpad), F32)
        b1s = jnp.zeros((num_experts, 1, Hpad), F32)
        w2t = jnp.zeros((num_experts, Hpad, D), F32)
        b2s = jnp.zeros((num_experts, 1, D), F32)
        eks = jax.random.split(ke, num_experts)
        for e, he in enumerate(expert_sizes):
            k1, k2 = jax.random.split(eks[e])
            ew1, eb1 = lin(k1, he, D)
            ew2, eb2 = lin(k2, D, he)
            w1t = w1t.at[e, :, :he].set(ew1.T)
            b1s = b1s.at[e, 0, :he].set(eb1)
            w2t = w2t.at[e, :he, :].set(ew2.T)
            b2s = b2s.at[e, 0, :].set(eb2)
        experts = dict(w1t=w1t.astype(BF16), b1=b1s,
                       w2t=w2t.astype(BF16), b2=b2s)

        layers.append(dict(
            attn=attn, gate=gate, experts=experts,
            ln1_g=jnp.ones((1, D), F32), ln1_b=jnp.zeros((1, D), F32),
            ln2_g=jnp.ones((1, D), F32), ln2_b=jnp.zeros((1, D), F32)))
    return dict(layers=layers, num_experts=num_experts,
                expert_sizes=expert_sizes)


def hetereo_moe_transformer(x, snr, params, noise_key, *, nhead, tau, top_k):
    B, L, D = x.shape
    T = B * L
    E = params['num_experts']
    tm = _pick_tm(T)
    all_gate_scores, all_expert_masks = [], []
    for lp in params['layers']:
        noise_key, sub = jax.random.split(noise_key)
        # Gumbel noise (same formula as the PyTorch reference), outside kernel.
        u = jax.random.uniform(sub, (T, E), F32)
        gumbel = -jnp.log(-jnp.log(u + 1e-9) + 1e-9)
        # --- fused self-attention + residual + LayerNorm1 ---
        x1 = attn_ln_forward(x, lp, nhead)                      # (B, L, D)
        # --- fused SNR gating + top-k heterogeneous MoE + residual + LN2 ---
        x2_2d, gate_scores, expert_mask = moe_ln_forward(
            x1.reshape(T, D), gumbel, snr, lp, tau=tau, top_k=top_k, tm=tm)
        x = x2_2d.reshape(B, L, D)
        all_gate_scores.append(gate_scores)
        all_expert_masks.append(expert_mask)
    return x, all_gate_scores, all_expert_masks


# --------------------------------- main --------------------------------------
if __name__ == "__main__":
    B, L, D = 2, 8, 32
    nhead, num_layers, num_experts, top_k = 4, 2, 4, 2
    dim_feedforward = 32
    tau = 1.0
    snr = 10.0  # scalar SNR, broadcast to every token (as in the PyTorch code)

    key = jax.random.PRNGKey(0)
    pkey, xkey, nkey = jax.random.split(key, 3)
    params = init_params(pkey, D, nhead, num_layers, num_experts,
                         dim_feedforward)
    x = jax.random.normal(xkey, (B, L, D), F32)

    out, gate_scores, expert_masks = hetereo_moe_transformer(
        x, snr, params, nkey, nhead=nhead, tau=tau, top_k=top_k)

    out = jax.block_until_ready(out)
    gate_scores = [jax.block_until_ready(g) for g in gate_scores]
    expert_masks = [jax.block_until_ready(m) for m in expert_masks]

    assert out.shape == (B, L, D)
    assert len(gate_scores) == num_layers and len(expert_masks) == num_layers
    assert gate_scores[0].shape == (B * L, num_experts)
    assert expert_masks[0].shape == (B * L, num_experts)
    assert bool(jnp.all(jnp.isfinite(out)))
    assert bool(jnp.all(jnp.sum(expert_masks[0], axis=-1) == top_k))
    print("KERNEL_OK")
</pallas_src>

<mosaic_0001>
module attributes {stable_mosaic.version = 11 : i64} {
  func.func @_attn_ln_kernel(%arg0: i32, %arg1: memref<1x8x32xf32, #tpu.memory_space<vmem>>, %arg2: memref<32x96xbf16, #tpu.memory_space<vmem>>, %arg3: memref<1x96xf32, #tpu.memory_space<vmem>>, %arg4: memref<32x32xbf16, #tpu.memory_space<vmem>>, %arg5: memref<1x32xf32, #tpu.memory_space<vmem>>, %arg6: memref<1x32xf32, #tpu.memory_space<vmem>>, %arg7: memref<1x32xf32, #tpu.memory_space<vmem>>, %arg8: memref<1x8x32xf32, #tpu.memory_space<vmem>>) attributes {dimension_semantics = [#tpu.dimension_semantics<parallel>], iteration_bounds = array<i64: 2>, scalar_prefetch = 0 : i64, scratch_operands = 0 : i64, tpu.core_type = #tpu.core_type<tc>, window_params = [{transform_indices = @transform_0, window_bounds = array<i64: 1, 8, 32>}, {pipeline_mode = #tpu.pipeline_mode<synchronous>, transform_indices = @transform_1, window_bounds = array<i64: 32, 96>}, {pipeline_mode = #tpu.pipeline_mode<synchronous>, transform_indices = @transform_2, window_bounds = array<i64: 1, 96>}, {pipeline_mode = #tpu.pipeline_mode<synchronous>, transform_indices = @transform_3, window_bounds = array<i64: 32, 32>}, {pipeline_mode = #tpu.pipeline_mode<synchronous>, transform_indices = @transform_4, window_bounds = array<i64: 1, 32>}, {pipeline_mode = #tpu.pipeline_mode<synchronous>, transform_indices = @transform_5, window_bounds = array<i64: 1, 32>}, {pipeline_mode = #tpu.pipeline_mode<synchronous>, transform_indices = @transform_6, window_bounds = array<i64: 1, 32>}, {transform_indices = @transform_7, window_bounds = array<i64: 1, 8, 32>}]} {
    %c0 = arith.constant 0 : index
    %c0_0 = arith.constant 0 : index
    %c0_1 = arith.constant 0 : index
    %0 = vector.load %arg1[%c0, %c0_0, %c0_1] : memref<1x8x32xf32, #tpu.memory_space<vmem>>, vector<1x8x32xf32>
    %1 = vector.shape_cast %0 : vector<1x8x32xf32> to vector<8x32xf32>
    %2 = arith.truncf %1 : vector<8x32xf32> to vector<8x32xbf16>
    %c0_2 = arith.constant 0 : index
    %c0_3 = arith.constant 0 : index
    %3 = vector.load %arg2[%c0_2, %c0_3] : memref<32x96xbf16, #tpu.memory_space<vmem>>, vector<32x96xbf16>
    %cst = arith.constant dense<0.000000e+00> : vector<8x96xf32>
    %4 = tpu.matmul %2, %3, %cst {dimension_numbers = #tpu.dot_dimension_numbers<[1], [0], [0], [1], [0, 0, 1, 1], [], []>} : vector<8x32xbf16>, vector<32x96xbf16>, vector<8x96xf32> -> vector<8x96xf32>
    %c0_4 = arith.constant 0 : index
    %c0_5 = arith.constant 0 : index
    %5 = vector.load %arg3[%c0_4, %c0_5] : memref<1x96xf32, #tpu.memory_space<vmem>>, vector<1x96xf32>
    %6 = vector.broadcast %5 : vector<1x96xf32> to vector<8x96xf32>
    %7 = arith.addf %4, %6 : vector<8x96xf32>
    %8 = vector.extract_strided_slice %7 {offsets = [0, 0], sizes = [8, 32], strides = [1, 1]} : vector<8x96xf32> to vector<8x32xf32>
    %9 = vector.shape_cast %8 : vector<8x32xf32> to vector<8x4x8xf32>
    %10 = arith.truncf %9 : vector<8x4x8xf32> to vector<8x4x8xbf16>
    %11 = vector.extract_strided_slice %7 {offsets = [0, 32], sizes = [8, 32], strides = [1, 1]} : vector<8x96xf32> to vector<8x32xf32>
    %12 = vector.shape_cast %11 : vector<8x32xf32> to vector<8x4x8xf32>
    %13 = arith.truncf %12 : vector<8x4x8xf32> to vector<8x4x8xbf16>
    %14 = vector.extract_strided_slice %7 {offsets = [0, 64], sizes = [8, 32], strides = [1, 1]} : vector<8x96xf32> to vector<8x32xf32>
    %15 = vector.shape_cast %14 : vector<8x32xf32> to vector<8x4x8xf32>
    %16 = arith.truncf %15 : vector<8x4x8xf32> to vector<8x4x8xbf16>
    "tpu.trace_start"() <{level = 10 : i32, message = "qhd,khd->hqk"}> : () -> ()
    %cst_6 = arith.constant dense<0.000000e+00> : vector<4x8x8xf32>
    %17 = tpu.matmul %10, %13, %cst_6 {dimension_numbers = #tpu.dot_dimension_numbers<[2], [2], [0], [0], [0, 1, 0, 0, 1, 0], [1], [1]>} : vector<8x4x8xbf16>, vector<8x4x8xbf16>, vector<4x8x8xf32> -> vector<4x8x8xf32>
    "tpu.trace_stop"() : () -> ()
    %cst_7 = arith.constant 0.353553385 : f32
    %18 = vector.broadcast %cst_7 : f32 to vector<4x8x8xf32>
    %19 = arith.mulf %17, %18 : vector<4x8x8xf32>
    %cst_8 = arith.constant dense<0xFF800000> : vector<4x8xf32>
    %20 = vector.multi_reduction <maximumf>, %19, %cst_8 [2] : vector<4x8x8xf32> to vector<4x8xf32>
    %21 = vector.shape_cast %20 : vector<4x8xf32> to vector<4x8x1xf32>
    %22 = vector.broadcast %21 : vector<4x8x1xf32> to vector<4x8x8xf32>
    %23 = arith.subf %19, %22 : vector<4x8x8xf32>
    %24 = math.exp %23 : vector<4x8x8xf32>
    %cst_9 = arith.constant dense<0.000000e+00> : vector<4x8xf32>
    %25 = vector.multi_reduction <add>, %24, %cst_9 [2] : vector<4x8x8xf32> to vector<4x8xf32>
    %26 = vector.shape_cast %25 : vector<4x8xf32> to vector<4x8x1xf32>
    %27 = tpu.reciprocal %26 {approx = true} : vector<4x8x1xf32> -> vector<4x8x1xf32>
    %28 = vector.broadcast %27 : vector<4x8x1xf32> to vector<4x8x8xf32>
    %29 = arith.mulf %24, %28 : vector<4x8x8xf32>
    %30 = arith.truncf %29 : vector<4x8x8xf32> to vector<4x8x8xbf16>
    "tpu.trace_start"() <{level = 10 : i32, message = "hqk,khd->qhd"}> : () -> ()
    %cst_10 = arith.constant dense<0.000000e+00> : vector<4x8x8xf32>
    %31 = tpu.matmul %16, %30, %cst_10 {dimension_numbers = #tpu.dot_dimension_numbers<[0], [2], [2], [1], [0, 1, 0, 2, 1, 1], [1], [0]>} : vector<8x4x8xbf16>, vector<4x8x8xbf16>, vector<4x8x8xf32> -> vector<4x8x8xf32>
    %32 = tpu.transpose %31, [2, 0, 1] : vector<4x8x8xf32> -> vector<8x4x8xf32>
    "tpu.trace_stop"() : () -> ()
    %33 = vector.shape_cast %32 : vector<8x4x8xf32> to vector<8x32xf32>
    %34 = arith.truncf %33 : vector<8x32xf32> to vector<8x32xbf16>
    %c0_11 = arith.constant 0 : index
    %c0_12 = arith.constant 0 : index
    %35 = vector.load %arg4[%c0_11, %c0_12] : memref<32x32xbf16, #tpu.memory_space<vmem>>, vector<32x32xbf16>
    %cst_13 = arith.constant dense<0.000000e+00> : vector<8x32xf32>
    %36 = tpu.matmul %34, %35, %cst_13 {dimension_numbers = #tpu.dot_dimension_numbers<[1], [0], [0], [1], [0, 0, 1, 1], [], []>} : vector<8x32xbf16>, vector<32x32xbf16>, vector<8x32xf32> -> vector<8x32xf32>
    %c0_14 = arith.constant 0 : index
    %c0_15 = arith.constant 0 : index
    %37 = vector.load %arg5[%c0_14, %c0_15] : memref<1x32xf32, #tpu.memory_space<vmem>>, vector<1x32xf32>
    %38 = vector.broadcast %37 : vector<1x32xf32> to vector<8x32xf32>
    %39 = arith.addf %36, %38 : vector<8x32xf32>
    %40 = arith.addf %1, %39 : vector<8x32xf32>
    %cst_16 = arith.constant dense<0.000000e+00> : vector<8xf32>
    %41 = vector.multi_reduction <add>, %40, %cst_16 [1] : vector<8x32xf32> to vector<8xf32>
    %42 = vector.shape_cast %41 : vector<8xf32> to vector<8x1xf32>
    %cst_17 = arith.constant 3.200000e+01 : f32
    %43 = vector.broadcast %cst_17 : f32 to vector<8x1xf32>
    %44 = arith.divf %42, %43 : vector<8x1xf32>
    %45 = vector.broadcast %44 : vector<8x1xf32> to vector<8x32xf32>
    %46 = arith.subf %40, %45 : vector<8x32xf32>
    %47 = arith.mulf %46, %46 : vector<8x32xf32>
    %cst_18 = arith.constant dense<0.000000e+00> : vector<8xf32>
    %48 = vector.multi_reduction <add>, %47, %cst_18 [1] : vector<8x32xf32> to vector<8xf32>
    %49 = vector.shape_cast %48 : vector<8xf32> to vector<8x1xf32>
    %cst_19 = arith.constant 3.200000e+01 : f32
    %50 = vector.broadcast %cst_19 : f32 to vector<8x1xf32>
    %51 = arith.divf %49, %50 : vector<8x1xf32>
    %cst_20 = arith.constant 9.99999974E-6 : f32
    %52 = vector.broadcast %cst_20 : f32 to vector<8x1xf32>
    %53 = arith.addf %51, %52 : vector<8x1xf32>
    %54 = math.rsqrt %53 : vector<8x1xf32>
    %55 = vector.broadcast %54 : vector<8x1xf32> to vector<8x32xf32>
    %56 = arith.mulf %46, %55 : vector<8x32xf32>
    %c0_21 = arith.constant 0 : index
    %c0_22 = arith.constant 0 : index
    %57 = vector.load %arg6[%c0_21, %c0_22] : memref<1x32xf32, #tpu.memory_space<vmem>>, vector<1x32xf32>
    %58 = vector.broadcast %57 : vector<1x32xf32> to vector<8x32xf32>
    %59 = arith.mulf %56, %58 : vector<8x32xf32>
    %c0_23 = arith.constant 0 : index
    %c0_24 = arith.constant 0 : index
    %60 = vector.load %arg7[%c0_23, %c0_24] : memref<1x32xf32, #tpu.memory_space<vmem>>, vector<1x32xf32>
    %61 = vector.broadcast %60 : vector<1x32xf32> to vector<8x32xf32>
    %62 = arith.addf %59, %61 : vector<8x32xf32>
    %c0_25 = arith.constant 0 : index
    %c0_26 = arith.constant 0 : index
    %c0_27 = arith.constant 0 : index
    %63 = vector.load %arg8[%c0_25, %c0_26, %c0_27] : memref<1x8x32xf32, #tpu.memory_space<vmem>>, vector<1x8x32xf32>
    %64 = vector.shape_cast %63 : vector<1x8x32xf32> to vector<8x32xf32>
    %65 = vector.shape_cast %62 : vector<8x32xf32> to vector<1x8x32xf32>
    tpu.vector_store %arg8[%c0_25, %c0_26, %c0_27], %65 {strides = array<i32>} : memref<1x8x32xf32, #tpu.memory_space<vmem>>, vector<1x8x32xf32>,
    return
  }
  func.func @transform_0(%arg0: i32) -> (i32, i32, i32) {
    %c0_i32 = arith.constant 0 : i32
    %c0_i32_0 = arith.constant 0 : i32
    %c0_i32_1 = arith.constant 0 : i32
    return %arg0, %c0_i32, %c0_i32_0 : i32, i32, i32
  }
  func.func @transform_1(%arg0: i32) -> (i32, i32) {
    %c0_i32 = arith.constant 0 : i32
    %c0_i32_0 = arith.constant 0 : i32
    %c0_i32_1 = arith.constant 0 : i32
    return %c0_i32, %c0_i32_0 : i32, i32
  }
  func.func @transform_2(%arg0: i32) -> (i32, i32) {
    %c0_i32 = arith.constant 0 : i32
    %c0_i32_0 = arith.constant 0 : i32
    %c0_i32_1 = arith.constant 0 : i32
    return %c0_i32, %c0_i32_0 : i32, i32
  }
  func.func @transform_3(%arg0: i32) -> (i32, i32) {
    %c0_i32 = arith.constant 0 : i32
    %c0_i32_0 = arith.constant 0 : i32
    %c0_i32_1 = arith.constant 0 : i32
    return %c0_i32, %c0_i32_0 : i32, i32
  }
  func.func @transform_4(%arg0: i32) -> (i32, i32) {
    %c0_i32 = arith.constant 0 : i32
    %c0_i32_0 = arith.constant 0 : i32
    %c0_i32_1 = arith.constant 0 : i32
    return %c0_i32, %c0_i32_0 : i32, i32
  }
  func.func @transform_5(%arg0: i32) -> (i32, i32) {
    %c0_i32 = arith.constant 0 : i32
    %c0_i32_0 = arith.constant 0 : i32
    %c0_i32_1 = arith.constant 0 : i32
    return %c0_i32, %c0_i32_0 : i32, i32
  }
  func.func @transform_6(%arg0: i32) -> (i32, i32) {
    %c0_i32 = arith.constant 0 : i32
    %c0_i32_0 = arith.constant 0 : i32
    %c0_i32_1 = arith.constant 0 : i32
    return %c0_i32, %c0_i32_0 : i32, i32
  }
  func.func @transform_7(%arg0: i32) -> (i32, i32, i32) {
    %c0_i32 = arith.constant 0 : i32
    %c0_i32_0 = arith.constant 0 : i32
    %c0_i32_1 = arith.constant 0 : i32
    return %arg0, %c0_i32, %c0_i32_0 : i32, i32, i32
  }
}

</mosaic_0001>

<bundles_post_ra>
// kernel: tpu_custom_call.1
= control target key start
LH: loop header
LB: loop body
LE: loop exit
PB: predicated region body
PF: predicated region fallthrough
CT: control target
= control target key end

     0   :  { %12 = vsyncpa [#allocation3], 0  ;;  %s3364_s0 = inlined_call_operand.hbm [shape: f32[2,8,32], index: 0, kind: input, shape index: {}]   ;;  %s3365_s1 = inlined_call_operand.hbm [shape: bf16[32,96], index: 1, kind: input, shape index: {}]   ;;  %s3366_s2 = inlined_call_operand.vmem [shape: f32[1,96], index: 2, kind: input, shape index: {}]   ;;  %s3367_s3 = inlined_call_operand.hbm [shape: bf16[32,32], index: 3, kind: input, shape index: {}]   ;;  %s3368_s4 = inlined_call_operand.vmem [shape: f32[1,32], index: 4, kind: input, shape index: {}]   ;;  %s3369_s5 = inlined_call_operand.vmem [shape: f32[1,32], index: 5, kind: input, shape index: {}]   ;;  %s3370_s6 = inlined_call_operand.vmem [shape: f32[1,32], index: 6, kind: input, shape index: {}]   ;;  %s3371_s7 = inlined_call_operand.hbm [shape: f32[2,8,32], index: 7, kind: output, shape index: {}]  }
   0x1   :  { %14 = vsyncpa [#allocation3 + $0x1], 0 }
   0x2   :  { %15 = vsyncpa [#allocation6], 0 }
   0x3   :  { %16 = vsyncpa [#allocation4], 0 }
   0x4   :  { %18 = vsyncpa [#allocation4 + $0x1], 0  ;;  %s2906_s24 = smov 0   ;;  %s2908_s25 = smov 0  }
   0x5   :  { %s2910_s26 = smov 0   ;;  %s2912_s27 = smov 0  }
   0x6 LB: > { %s2927_s28 = sadd.s32 4294967295, %s2845_s27   ;;  %s2458_s29 = sadd.s32 4294967294, %s2845_s27   ;;  %s2845_s27 = sphi %s2912_s27, %s3391_s27   ;;  %s2841_s26 = sphi %s2910_s26, %s3390_s26   ;;  %s2837_s25 = sphi %s2908_s25, %s3389_s25   ;;  %s2833_s24 = sphi %s2906_s24, %s3388_s24  }
   0x7   : > { %p44_p0 = scmp.ne.s32.totalorder %s2837_s25, %s2833_s24  ;;  %p3372_p1 = scmp.eq.s32.totalorder %s2927_s28, 0 }
   0x8   : > { %p200_p3 = scmp.eq.s32.totalorder %s2458_s29, 1  ;;  %p2459_p5 = scmp.ge.s32.totalorder %s2845_s27, 1 }
   0x9   : > { %p2936_p4 = por %p3372_p1, %p44_p0  ;;  %p207_p7 = scmp.lt.s32.totalorder %s2845_s27, 3 }
   0xa   : > { %p2941_p6 = por %p200_p3, %p44_p0  ;;  %s2847_s10 = smov [#allocation5]  }
   0xb   : > { %s3375_s30 = scalar_select %p2936_p4, 1, 0 }
   0xc   : > { %s3376_s8 = scalar_select %p2941_p6, 1, 0 }
   0xd   : > { %p2946_p8 = pnand %p2459_p5, %p207_p7  ;;  %s219_s11 = sshll.u32 %s2847_s10, 4  ;;  %s2950_s11 = int_to_ptr.vmem [resolvable:$true] %s219_s11 }
   0xe   : > { %s2848_s13 = smov [#allocation7]   ;;  %s2689_s17 = scalar_lea.hbm %s3365_s1, 256 }
   0xf   : > { %p2596_p9 = pneg %p2946_p8  ;;  %s235_s14 = sshll.u32 %s2848_s13, 4  ;;  %s2961_s14 = int_to_ptr.vmem [resolvable:$true] %s235_s14 }
  0x10   : > { %p2690_p12 = scmp.ne.s32.totalorder %s3365_s1, %s2689_s17  ;;  %p2696_p5 = scmp.lt.u32.totalorder %s2689_s17, %s3365_s1 }
  0x11   : > { %p2957_p11 = pnand %p2596_p9, %p3372_p1 }
  0x13   : > { %p2691_p13 = pneg %p2957_p11 }
  0x15   : > { %p2692_p0 = pnand %p2691_p13, %p2690_p12 }
  0x17   : > { %p2693_p3 = pneg %p2692_p0 }
  0x19   : > { %p2698_p7 = pnand %p2696_p5, %p2693_p3 }
  0x1b   : > { %2701 = shalt.err (!%p2698_p7)
}
  0x1c   : > { %s2702_s22 = scalar_lea.vmem %s2950_s11, 256  ;;  %p2710_p2 = scmp.lt.s32.totalorder %s2950_s11, %s2950_s11 }
  0x1d   : > { %p2703_p9 = scmp.ne.s32.totalorder %s2950_s11, %s2702_s22  ;;  %p2711_p12 = scmp.lt.s32.totalorder %s2702_s22, %s2702_s22 }
  0x1f   : > { %p2705_p10 = pnand %p2703_p9, %p2691_p13  ;;  %p2712_p0 = por %p2711_p12, %p2710_p2 }
  0x21   : > { %p2706_p1 = pneg %p2705_p10 }
  0x23   : > { %p2713_p6 = pnand %p2712_p0, %p2706_p1 }
  0x25   : > { %2716 = shalt.err (!%p2713_p6)
}
  0x26   : > { %s2849_s23 = smov 64   ;;  %s2850_s29 = smov 4  }
  0x27   : > { %2599 = dma.hbm_to_vmem [thread:$0]  (!%p2957_p11), %s3365_s1, 256, %s2950_s11, [#allocation6], %s2849_s23, %s2849_s23, %s2850_s29  }
  0x28   : > { %s2717_s17 = scalar_lea.hbm %s3367_s3, 256 }
  0x29   : > { %p2718_p2 = scmp.ne.s32.totalorder %s3367_s3, %s2717_s17  ;;  %p2724_p10 = scmp.lt.u32.totalorder %s2717_s17, %s3367_s3 }
  0x2b   : > { %p2720_p1 = pnand %p2718_p2, %p2691_p13 }
  0x2d   : > { %p2721_p6 = pneg %p2720_p1 }
  0x2f   : > { %p2726_p3 = pnand %p2724_p10, %p2721_p6 }
  0x31   : > { %2729 = shalt.err (!%p2726_p3)
}
  0x32   : > { %s2730_s11 = scalar_lea.vmem %s2961_s14, 256  ;;  %p2738_p12 = scmp.lt.s32.totalorder %s2961_s14, %s2961_s14 }
  0x33   : > { %p2731_p5 = scmp.ne.s32.totalorder %s2961_s14, %s2730_s11  ;;  %p2739_p0 = scmp.lt.s32.totalorder %s2730_s11, %s2730_s11 }
  0x35   : > { %p2733_p7 = pnand %p2731_p5, %p2691_p13  ;;  %p2740_p2 = por %p2739_p0, %p2738_p12 }
  0x37   : > { %p2734_p9 = pneg %p2733_p7 }
  0x39   : > { %p2741_p1 = pnand %p2740_p2, %p2734_p9 }
  0x3b   : > { %2744 = shalt.err (!%p2741_p1)
}
  0x3c   : > { %2602 = dma.hbm_to_vmem [thread:$0]  (!%p2957_p11), %s3367_s3, 256, %s2961_s14, [#allocation6], %s2849_s23, %s2849_s23, %s2850_s29  }
  0x3d   : > { %s3016_s13 = sadd.s32 1, %s2845_s27   ;;  %s31_s12 = sadd.s32 1, %s2841_s26 }
  0x3e   : > { %s28_s15 = ssub.s32 %s2845_s27, %s3016_s13  ;;  %p38_p13 = scmp.ne.s32.totalorder %s2841_s26, %s2837_s25 }
  0x3f   : > { %p29_p6 = scmp.eq.s32.totalorder %s28_s15, 0  ;;  %p39_p10 = scmp.eq.s32.totalorder %s2845_s27, 0 }
  0x40   : > { %p3379_p3 = scmp.eq.s32.totalorder %s2927_s28, 1  ;;  %p2613_p7 = scmp.lt.s32.totalorder %s2845_s27, 2 }
  0x41   : > { %s3032_s17 = scalar_select %p29_p6, %s2841_s26, %s31_s12  }
  0x42   : > { %p3026_p5 = por %p3379_p3, %p38_p13  ;;  %p40_p9 = por %p39_p10, %p38_p13 }
  0x43   : > { %s258_s18 = sand.u32 1, %s2841_s26   ;;  %s2464_s14 = sshll.u32 %s2845_s27, 7 }
  0x44   : > { %s3380_s16 = scalar_select %p3026_p5, 1, 0 }
  0x45   : > { %s2463_s19 = sshll.u32 %s258_s18, 3  ;;  %s3039_s20 = scalar_lea.hbm %s3364_s0, %s2464_s14 }
  0x46   : > { %s262_s21 = scalar_lea.vmem [#allocation2], %s2463_s19  ;;  %p3043_p11 = pnand %p2613_p7, %p40_p9 }
  0x47   : > { %s269_s11 = sshll.u32 %s262_s21, 4  ;;  %s259_s10 = scalar_lea.sflag [#allocation3], %s258_s18  ;;  %s3041_s11 = int_to_ptr.vmem [resolvable:$true] %s269_s11 }
  0x48   : > { %s2745_s12 = scalar_lea.hbm %s3039_s20, 128  ;;  %p2747_p0 = pneg %p3043_p11 }
  0x49   : > { %p2746_p12 = scmp.ne.s32.totalorder %s3039_s20, %s2745_s12  ;;  %s2750_s14 = scalar_lea.hbm %s3364_s0, 256 }
  0x4a   : > { %p2751_p13 = scmp.lt.u32.totalorder %s3039_s20, %s3364_s0  ;;  %p2752_p6 = scmp.lt.u32.totalorder %s2750_s14, %s2745_s12 }
  0x4b   : > { %p2748_p2 = pnand %p2747_p0, %p2746_p12  ;;  %p2754_p3 = scmp.lt.u32.totalorder %s2745_s12, %s3039_s20 }
  0x4c   : > { %p2753_p10 = por %p2752_p6, %p2751_p13 }
  0x4d   : > { %p2749_p1 = pneg %p2748_p2 }
  0x4e   : > { %p2755_p7 = por %p2754_p3, %p2753_p10 }
  0x50   : > { %p2756_p9 = pnand %p2755_p7, %p2749_p1 }
  0x52   : > { %2759 = shalt.err (!%p2756_p9)
}
  0x53   : > { %s2760_s18 = scalar_lea.vmem %s3041_s11, 128  ;;  %s2851_s21 = smov [#allocation2]  }
  0x54   : > { %p2761_p12 = scmp.ne.s32.totalorder %s3041_s11, %s2760_s18  ;;  %s2765_s15 = sshll.u32 %s2851_s21, 4  ;;  %s2766_s15 = int_to_ptr.vmem [resolvable:$false] %s2765_s15 }
  0x55   : > { %s2767_s19 = scalar_lea.vmem %s2766_s15, 256  ;;  %p2768_p4 = scmp.lt.s32.totalorder %s3041_s11, %s2766_s15 }
  0x56   : > { %p2763_p2 = pnand %p2761_p12, %p2747_p0  ;;  %p2769_p13 = scmp.lt.s32.totalorder %s2767_s19, %s2760_s18 }
  0x58   : > { %p2764_p5 = pneg %p2763_p2  ;;  %p2770_p6 = por %p2769_p13, %p2768_p4 }
  0x5a   : > { %p2771_p10 = pnand %p2770_p6, %p2764_p5 }
  0x5c   : > { %2774 = shalt.err (!%p2771_p10)
}
  0x5d   : > { %2606 = dma.hbm_to_vmem [thread:$0]  (!%p3043_p11), %s3039_s20, 128, %s3041_s11, %s259_s10  }
  0x5e   : > { %278 = sbr.rel (%p2946_p8) target bundleno = 2498 (0x9c2), region = 48  ;;  %s3075_s12 = sand.u32 (!%p2946_p8), 1, %s2837_s25  }
  0x5f   : > { %s2466_s14 = sshll.u32 (!%p2946_p8), %s3075_s12, 3  ;;  %s281_s23 = scalar_lea.sflag (!%p2946_p8), [#allocation3], %s3075_s12 }
  0x60   : > { %s3081_s29 = scalar_lea.vmem (!%p2946_p8), [#allocation2], %s2466_s14  ;;  %p3382_p4 = scmp.ne.s32.totalorder (!%p2946_p8), %s3375_s30, 0 }
  0x65   : > { %2820 = dma.done.wait (%p3382_p4), %s281_s23, 128  }
  0x66   : > { %2822 = vsyncadd (%p3382_p4), %s281_s23, 4294967168  ;;  %p3383_p5 = scmp.eq.s32.totalorder %s2927_s28, 0 }
  0x68   : > { %2824 = dma.done.wait (%p3383_p5), [#allocation6], 512   ;;  %p3384_p8 = pmov %p3383_p5 }
  0x69   : > { %v2852_v0 = vmov 0.0   ;;  %vm2853_vm0 = vmmov 0   ;;  %v2666_v1 = vld [vmem:[#allocation5] sm:$0xff]   ;;  %v2667_v2 = vld [vmem:[#allocation5 + $0x8] sm:$0xff]   ;;  %v324_v3 = vld [vmem:[%s3081_s29] sm:$0xff]  ;;  %vm349_vm1 = vcmask 261120   ;;  %v408_v16 = vlaneseq }
  0x6a   : > { %2826 = vsyncadd (%p3384_p8), [#allocation6], 4294966784  ;;  %2520 = vmatprep.subr.bf16.mxu0 %v2852_v0  ;;  %2524 = vmatprep.mubr.msk.bf16.mxu0 %vm2853_vm0, %v2852_v0  ;;  %v325_v4 = vpack.c.bf16 %v324_v3, %v324_v3  ;;  %v2470_v5 = vld [vmem:[%s3366_s2] ss:$0 sm:$0xff]  ;;  %s2854_s20 = smov 104   ;;  %s2855_s11 = smov 120  }
  0x6b   : > { %2528 = vmatprep.subr.bf16.mxu1 %v2852_v0  ;;  %2530 = vmatprep.mubr.msk.bf16.mxu1 %vm2853_vm0, %v2852_v0  ;;  %s2856_s22 = smov 96   ;;  %s2857_s10 = smov 112   ;;  %v2858_v14 = vmov 1983009808   ;;  %v409_v18 = vshrl.u32 %v408_v16, 7  ;;  %vm1139_vm2 = vcmask 1043456  }
  0x6c   : > { %2521 = vmatpush3.bf16.msra.mxu0 %v2666_v1  ;;  %v406_v15 = vunpack.c.l.s4 %v2858_v14  ;;  %v2859_v20 = vmov 1934713408   ;;  %s2861_s18 = smov 64   ;;  %vm1135_vm3 = vcmask 64512   ;;  %s2862_s21 = smov 16   ;;  %vm2252_vm4 = vcmask 130048  }
  0x6d   : > { %2522 = vmatprep.subr.bf16.mxu0 %v2852_v0  ;;  %v438_v21 = vunpack.c.l.s4 %v2859_v20  ;;  %s2863_s15 = smov 8   ;;  %s2864_s19 = smov 24   ;;  %vm2254_vm5 = vcmask 195584  }
  0x6e   : > { %v407_v17 = vunpack.c.0.s8 %v406_v15  ;;  %s2356_s23 = scalar_lea.sflag [#allocation4], %s3075_s12  ;;  %p3385_p0 = scmp.ne.s32.totalorder %s3380_s16, 0 }
  0x6f   : > { %v439_v24 = vunpack.c.0.s8 %v438_v21 }
  0x70   : > { %2523 = vmatpush3.bf16.msra.mxu0 %v2667_v2  ;;  %v3121_v23 = vsub.s32 %v407_v17, %v409_v18 }
  0x71   : > { %2540 = vmatprep.subr.bf16.mxu0 %v2852_v0  ;;  %v3127_v35 = vsub.s32 %v439_v24, %v409_v18 }
  0x73   : > { %2525 = vmatmul.mubr.msk.bf16.vlgmr.msra.gmra.mrb[0].mxu0 %vm349_vm1, %v325_v4 }
  0x74   : > { %2542 = vmatprep.mubr.msk.bf16.mxu0 %vm2853_vm0, %v2852_v0 }
 0x146   : > { %v387_v6 = vpop.f32.mrb[0].mxu0 }
 0x147   : > { %v3106_v7 = vadd.f32 %v2470_v5, %v387_v6  ;;  %v2526_v8 = vpop.f32.mrb[1].mxu0 }
 0x148   : > { %v390_v9 = vpop.f32.mrb[2].mxu0 }
 0x149   : > { %400 = vrot.lane.b32.xlu1 %v3106_v7, %s2854_s20  ;;  %394 = vrot.lane.b32.xlu0 %v3106_v7, %s2855_s11  ;;  %v2527_v10 = vpop.f32.mrb[3].mxu0 }
 0x14d   : > { %479 = vrot.lane.b32.xlu1 %v3106_v7, %s2856_s22  ;;  %397 = vrot.lane.b32.xlu0 %v3106_v7, %s2857_s10  ;;  %s322_s10 = scalar_lea.vmem [#allocation8], %s2466_s14 }
 0x1bb   : > { %v3112_v11 = vpop.permute.xlu0 %394  ;;  %v3115_v12 = vpop.permute.xlu1 %400 }
 0x1bc   : > { %481 = vrot.lane.b32.xlu0 %v3112_v11, %s2856_s22 }
 0x1bf   : > { %v3117_v13 = vpop.permute.xlu0 %397  ;;  %v480_v19 = vpop.permute.xlu1 %479 }
 0x1c0   : > { %485 = vrot.lane.b32.xlu0 %v3115_v12, %s2856_s22  ;;  %483 = vrot.lane.b32.xlu1 %v3117_v13, %s2856_s22  ;;  %s2495_s22 = sshll.u32 %s2927_s28, 7  ;;  %s2865_s28 = smov [#allocation8]  }
 0x1c1   : > { %s2779_s14 = sshll.u32 %s2865_s28, 4  ;;  %s2780_s14 = int_to_ptr.vmem [resolvable:$false] %s2779_s14 }
 0x22e   : > { %v482_v22 = vpop.permute.xlu0 %481 }
 0x232   : > { %v484_v25 = vpop.permute.xlu1 %483  ;;  %v486_v26 = vpop.permute.xlu0 %485 }
 0x233   : > { %v491_v27 = vcombine.low %v480_v19, %v484_v25  ;;  %v492_v28 = vcombine.high %v480_v19, %v484_v25  ;;  %v507_v29 = vcombine.low %v482_v22, %v486_v26  ;;  %v508_v30 = vcombine.high %v482_v22, %v486_v26 }
 0x235   : > { %v499_v31 = vrot.slane %v491_v27, %v3121_v23  ;;  %v506_v32 = vrot.slane %v492_v28, %v3121_v23  ;;  %v515_v33 = vrot.slane %v507_v29, %v3121_v23  ;;  %v522_v34 = vrot.slane %v508_v30, %v3121_v23 }
 0x236   : > { %v2860_v28 = vmov 0  }
 0x237   : > { %v524_v36 = vcombine.high %v499_v31, %v515_v33  ;;  %v523_v37 = vcombine.low %v499_v31, %v515_v33  ;;  %v539_v38 = vcombine.low %v506_v32, %v522_v34  ;;  %v540_v41 = vcombine.high %v506_v32, %v522_v34 }
 0x239   : > { %v538_v39 = vrot.slane %v524_v36, %v3127_v35  ;;  %v531_v40 = vrot.slane %v523_v37, %v3127_v35  ;;  %v547_v44 = vrot.slane %v539_v38, %v3127_v35  ;;  %v554_v46 = vrot.slane %v540_v41, %v3127_v35 }
 0x23b   : > { %v561_v42 = vpack.c.bf16 %v538_v39, %v538_v39  ;;  %v559_v43 = vpack.c.bf16 %v531_v40, %v531_v40  ;;  %v556_v45 = vcombine.high %v538_v39, %v2852_v0  ;;  %v563_v47 = vpack.c.bf16 %v547_v44, %v547_v44 }
 0x23c   : > { %v557_v49 = vcombine.high %v547_v44, %v2852_v0  ;;  %v555_v50 = vcombine.high %v531_v40, %v2852_v0  ;;  %v558_v53 = vcombine.high %v554_v46, %v2852_v0  ;;  %v565_v55 = vpack.c.bf16 %v554_v46, %v554_v46 }
 0x23d   : > { %749 = vxpose.xlu0.c.b16.start.end [1/1] (short) (narrow) %v561_v42, 16  ;;  %717 = vxpose.xlu1.c.b16.start.end [1/1] (short) (narrow) %v559_v43, 16  ;;  %v562_v48 = vpack.c.bf16 %v556_v45, %v556_v45  ;;  %v403_v44 = vcombine.low %v3106_v7, %v3117_v13  ;;  %v404_v45 = vcombine.high %v3106_v7, %v3117_v13 }
 0x23e   : > { %v564_v51 = vpack.c.bf16 %v557_v49, %v557_v49  ;;  %v560_v52 = vpack.c.bf16 %v555_v50, %v555_v50  ;;  %v566_v54 = vpack.c.bf16 %v558_v53, %v558_v53  ;;  %v419_v46 = vcombine.low %v3112_v11, %v3115_v12 }
 0x23f   : > { %v418_v49 = vrot.slane %v404_v45, %v3121_v23 }
 0x240   : > { %v427_v50 = vrot.slane %v419_v46, %v3121_v23 }
 0x241   : > { %781 = vxpose.xlu0.c.b16.start.end [1/1] (short) (narrow) %v563_v47, 16  ;;  %765 = vxpose.xlu1.c.b16.start.end [1/1] (short) (narrow) %v562_v48, 16  ;;  %v420_v47 = vcombine.high %v3112_v11, %v3115_v12  ;;  %v411_v48 = vrot.slane %v403_v44, %v3121_v23 }
 0x243   : > { %v436_v53 = vcombine.high %v411_v48, %v427_v50 }
 0x245   : > { %797 = vxpose.xlu1.c.b16.start.end [1/1] (short) (narrow) %v564_v51, 16  ;;  %733 = vxpose.xlu0.c.b16.start.end [1/1] (short) (narrow) %v560_v52, 16  ;;  %v434_v51 = vrot.slane %v420_v47, %v3121_v23  ;;  %v435_v52 = vcombine.low %v411_v48, %v427_v50 }
 0x249   : > { %829 = vxpose.xlu1.c.b16.start.end [1/1] (short) (narrow) %v566_v54, 16  ;;  %813 = vxpose.xlu0.c.b16.start.end [1/1] (short) (narrow) %v565_v55, 16  ;;  %v451_v54 = vcombine.low %v418_v49, %v434_v51  ;;  %v452_v55 = vcombine.high %v418_v49, %v434_v51 }
 0x2a3   : > { %v757_v56 = vpop.trf.xlu0  ;;  %v725_v57 = vpop.trf.xlu1 }
 0x2a7   : > { %v789_v58 = vpop.trf.xlu0  ;;  %v773_v59 = vpop.trf.xlu1 }
 0x2a8   : > { %v845_v62 = vcombine.low %v725_v57, %v789_v58  ;;  %v459_v57 = vrot.slane %v451_v54, %v3127_v35 }
 0x2aa   : > { %v852_v5 = vrot.slane %v845_v62, %v3121_v23 }
 0x2ab   : > { %v805_v60 = vpop.trf.xlu1  ;;  %v741_v61 = vpop.trf.xlu0 }
 0x2ac   : > { %v879_v63 = vcombine.low %v741_v61, %v805_v60  ;;  %v469_v61 = vcombine.high %v459_v57, %v2852_v0 }
 0x2ae   : > { %v886_v6 = vrot.slane %v879_v63, %v3121_v23 }
 0x2af   : > { %v837_v1 = vpop.trf.xlu1  ;;  %v821_v2 = vpop.trf.xlu0 }
 0x2b0   : > { %v887_v3 = vcombine.low %v773_v59, %v837_v1  ;;  %v853_v4 = vcombine.low %v757_v56, %v821_v2 }
 0x2b2   : > { %v894_v8 = vrot.slane %v887_v3, %v3121_v23  ;;  %v860_v9 = vrot.slane %v853_v4, %v3121_v23 }
 0x2b4   : > { %v895_v10 = vcombine.low %v886_v6, %v894_v8  ;;  %v896_v14 = vcombine.high %v886_v6, %v894_v8  ;;  %v861_v15 = vcombine.low %v852_v5, %v860_v9  ;;  %v862_v16 = vcombine.high %v852_v5, %v860_v9 }
 0x2b6   : > { %v869_v17 = vrot.slane %v861_v15, %v3127_v35  ;;  %v903_v18 = vrot.slane %v895_v10, %v3127_v35  ;;  %v876_v19 = vrot.slane %v862_v16, %v3127_v35  ;;  %v910_v20 = vrot.slane %v896_v14, %v3127_v35 }
 0x2b8   : > { %v915_v21 = vpack.i.b16 %v903_v18, %v869_v17  ;;  %v917_v22 = vshrl.u32 %v869_v17, 16  ;;  %v918_v24 = vshrl.u32 %v903_v18, 16  ;;  %v933_v25 = vshrl.u32 %v876_v19, 16 }
 0x2b9   : > { %v934_v27 = vshrl.u32 %v910_v20, 16  ;;  %v877_v29 = vcombine.high %v869_v17, %v2860_v28  ;;  %v911_v30 = vcombine.high %v903_v18, %v2860_v28  ;;  %v931_v31 = vpack.i.b16 %v910_v20, %v876_v19 }
 0x2ba   : > { %945 = vxpose.xlu0.c.b16.start.end [1/1] (short) (narrow) %v915_v21, 16  ;;  %v919_v26 = vpack.i.b16 %v918_v24, %v917_v22  ;;  %v878_v32 = vcombine.high %v876_v19, %v2860_v28  ;;  %v912_v37 = vcombine.high %v910_v20, %v2860_v28 }
 0x2bb   : > { %v935_v33 = vpack.i.b16 %v934_v27, %v933_v25  ;;  %v925_v34 = vshrl.u32 %v877_v29, 16  ;;  %v926_v36 = vshrl.u32 %v911_v30, 16  ;;  %v923_v38 = vpack.i.b16 %v911_v30, %v877_v29 }
 0x2bc   : > { %961 = vxpose.xlu1.c.b16.start.end [1/1] (short) (narrow) %v919_v26, 16  ;;  %v941_v40 = vshrl.u32 %v878_v32, 16  ;;  %v942_v41 = vshrl.u32 %v912_v37, 16  ;;  %v939_v42 = vpack.i.b16 %v912_v37, %v878_v32 }
 0x2bd   : > { %v927_v39 = vpack.i.b16 %v926_v36, %v925_v34 }
 0x2be   : > { %1009 = vxpose.xlu0.c.b16.start.end [1/1] (short) (narrow) %v931_v31, 16  ;;  %v943_v43 = vpack.i.b16 %v942_v41, %v941_v40 }
 0x2c0   : > { %1025 = vxpose.xlu1.c.b16.start.end [1/1] (short) (narrow) %v935_v33, 16 }
 0x2c2   : > { %977 = vxpose.xlu0.c.b16.start.end [1/1] (short) (narrow) %v923_v38, 16 }
 0x2c4   : > { %993 = vxpose.xlu1.c.b16.start.end [1/1] (short) (narrow) %v927_v39, 16 }
 0x2c6   : > { %1041 = vxpose.xlu0.c.b16.start.end [1/1] (short) (narrow) %v939_v42, 16 }
 0x2c8   : > { %1057 = vxpose.xlu1.c.b16.start.end [1/1] (short) (narrow) %v943_v43, 16 }
 0x2cc   : > { %569 = vrot.lane.b32.xlu1 %v3112_v11, %s2861_s18  ;;  %v466_v11 = vrot.slane %v452_v55, %v3127_v35 }
 0x2ce   : > { %v470_v62 = vcombine.high %v466_v11, %v2852_v0 }
 0x2cf   : > { %567 = vrot.lane.b32.xlu0 %v3106_v7, %s2861_s18  ;;  %v443_v7 = vrot.slane %v435_v52, %v3127_v35 }
 0x2d0   : > { %571 = vrot.lane.b32.xlu1 %v3117_v13, %s2861_s18  ;;  %v450_v13 = vrot.slane %v436_v53, %v3127_v35 }
 0x2d1   : > { %v467_v59 = vcombine.high %v443_v7, %v2852_v0  ;;  %v2474_v4 = vpack.c.bf16 %v459_v57, %v443_v7 }
 0x2d2   : > { %v468_v60 = vcombine.high %v450_v13, %v2852_v0  ;;  %v2475_v5 = vpack.c.bf16 %v466_v11, %v450_v13 }
 0x2d3   : > { %573 = vrot.lane.b32.xlu0 %v3115_v12, %s2861_s18  ;;  %v2476_v2 = vpack.c.bf16 %v469_v61, %v467_v59  ;;  %v662_v17 = vrot.slane %v2474_v4, %v3121_v23  ;;  %s2369_s18 = sshll.u32 %s322_s10, 4  ;;  %s3321_s18 = int_to_ptr.vmem [resolvable:$true] %s2369_s18 }
 0x2d4   : > { %v2477_v3 = vpack.c.bf16 %v470_v62, %v468_v60  ;;  %v670_v18 = vrot.slane %v2475_v5, %v3121_v23  ;;  %s2775_s30 = scalar_lea.vmem %s3321_s18, 128  ;;  %p2782_p7 = scmp.lt.s32.totalorder %s3321_s18, %s2780_s14 }
 0x2d5   : > { %v687_v15 = vrot.slane %v2476_v2, %v3121_v23  ;;  %p2776_p11 = scmp.ne.s32.totalorder %s3321_s18, %s2775_s30 }
 0x2d6   : > { %v695_v16 = vrot.slane %v2477_v3, %v3121_v23  ;;  %v671_v29 = vcombine.low %v662_v17, %v670_v18 }
 0x2d7   : > { %p2777_p1 = pnand %p2776_p11, %p3385_p0 }
 0x2d8   : > { %v696_v27 = vcombine.low %v687_v15, %v695_v16  ;;  %v678_v36 = vrot.slane %v671_v29, %v3127_v35 }
 0x2d9   : > { %p2778_p3 = pneg %p2777_p1 }
 0x2da   : > { %v703_v33 = vrot.slane %v696_v27, %v3127_v35  ;;  %v679_v47 = vcombine.high %v678_v36, %v2860_v28  ;;  %v708_v53 = vshrl.u32 %v678_v36, 16 }
 0x2dc   : > { %v704_v44 = vcombine.high %v703_v33, %v2860_v28  ;;  %v707_v46 = vpack.i.b16 %v703_v33, %v678_v36  ;;  %v709_v51 = vshrl.u32 %v703_v33, 16  ;;  %v714_v13 = vshrl.u32 %v679_v47, 16 }
 0x2de   : > { %v713_v49 = vpack.i.b16 %v704_v44, %v679_v47  ;;  %v710_v55 = vpack.i.b16 %v709_v51, %v708_v53  ;;  %v715_v7 = vshrl.u32 %v704_v44, 16 }
 0x2e0   : > { %v716_v57 = vpack.i.b16 %v715_v7, %v714_v13 }
 0x320   : > { %v953_v56 = vpop.trf.xlu0 }
 0x322   : > { %v969_v12 = vpop.trf.xlu1 }
 0x324   : > { %v1017_v58 = vpop.trf.xlu0 }
 0x325   : > { %v1073_v8 = vcombine.low %v953_v56, %v1017_v58 }
 0x326   : > { %v1033_v63 = vpop.trf.xlu1 }
 0x327   : > { %v1098_v10 = vcombine.low %v969_v12, %v1033_v63  ;;  %v1080_v20 = vrot.slane %v1073_v8, %v3121_v23 }
 0x328   : > { %v985_v1 = vpop.trf.xlu0 }
 0x329   : > { %v1105_v24 = vrot.slane %v1098_v10, %v3121_v23 }
 0x32a   : > { %v1001_v6 = vpop.trf.xlu1 }
 0x32c   : > { %v1049_v9 = vpop.trf.xlu0 }
 0x32d   : > { %v1081_v14 = vcombine.low %v985_v1, %v1049_v9 }
 0x32e   : > { %v1065_v19 = vpop.trf.xlu1 }
 0x32f   : > { %v1088_v21 = vrot.slane %v1081_v14, %v3121_v23  ;;  %v1106_v22 = vcombine.low %v1001_v6, %v1065_v19 }
 0x331   : > { %v1089_v25 = vcombine.low %v1080_v20, %v1088_v21  ;;  %v1113_v26 = vrot.slane %v1106_v22, %v3121_v23 }
 0x333   : > { %v1096_v30 = vrot.slane %v1089_v25, %v3127_v35  ;;  %v1114_v31 = vcombine.low %v1105_v24, %v1113_v26 }
 0x335   : > { %v1121_v32 = vrot.slane %v1114_v31, %v3127_v35  ;;  %v1097_v34 = vcombine.high %v1096_v30, %v2860_v28  ;;  %v1126_v39 = vshrl.u32 %v1096_v30, 16 }
 0x337   : > { %v1125_v37 = vpack.i.b16 %v1121_v32, %v1096_v30  ;;  %v1122_v38 = vcombine.high %v1121_v32, %v2860_v28  ;;  %v1127_v40 = vshrl.u32 %v1121_v32, 16  ;;  %v1132_v52 = vshrl.u32 %v1097_v34, 16 }
 0x339   : > { %v1141_v41 = vsel %vm1139_vm2, %v1125_v37, 0  ;;  %v1131_v42 = vpack.i.b16 %v1122_v38, %v1097_v34  ;;  %v1128_v43 = vpack.i.b16 %v1127_v40, %v1126_v39  ;;  %v1133_v50 = vshrl.u32 %v1122_v38, 16 }
 0x33a   : > { %2529 = vmatpush3.bf16.msra.mxu1 %v1141_v41 }
 0x33b   : > { %v1233_v45 = vsel %vm1139_vm2, %v1131_v42, 0  ;;  %2534 = vmatprep.subr.bf16.mxu1 %v2852_v0  ;;  %v1187_v48 = vsel %vm1139_vm2, %v1128_v43, 0  ;;  %v1134_v54 = vpack.i.b16 %v1133_v50, %v1132_v52 }
 0x33c   : > { %2541 = vmatpush3.bf16.msra.mxu0 %v1233_v45 }
 0x33d   : > { %2531 = vmatmul.mubr.msk.bf16.vlgmr.msra.gmra.mrb[0].mxu1 %vm1135_vm3, %v707_v46  ;;  %2552 = vmatprep.subr.bf16.mxu0 %v2852_v0  ;;  %v1279_v56 = vsel %vm1139_vm2, %v1134_v54, 0 }
 0x33e   : > { %2535 = vmatpush3.bf16.msra.mxu1 %v1187_v48  ;;  %2536 = vmatprep.mubr.msk.bf16.mxu1 %vm2853_vm0, %v2852_v0  ;;  %v570_v20 = vpop.permute.xlu1 %569 }
 0x33f   : > { %2543 = vmatmul.mubr.msk.bf16.vlgmr.msra.gmra.mrb[4].mxu0 %vm1135_vm3, %v713_v49  ;;  %2546 = vmatprep.subr.bf16.mxu1 %v2852_v0 }
 0x340   : > { %2554 = vmatprep.mubr.msk.bf16.mxu0 %vm2853_vm0, %v2852_v0 }
 0x341   : > { %v568_v19 = vpop.permute.xlu0 %567 }
 0x342   : > { %v572_v22 = vpop.permute.xlu1 %571 }
 0x343   : > { %v579_v25 = vcombine.low %v568_v19, %v572_v22  ;;  %v580_v32 = vcombine.high %v568_v19, %v572_v22 }
 0x345   : > { %2537 = vmatmul.mubr.msk.bf16.vlgmr.msra.gmra.mrb[4].mxu1 %vm1135_vm3, %v710_v55  ;;  %v574_v21 = vpop.permute.xlu0 %573  ;;  %v587_v27 = vrot.slane %v579_v25, %v3121_v23  ;;  %v594_v37 = vrot.slane %v580_v32, %v3121_v23 }
 0x346   : > { %2547 = vmatpush3.bf16.msra.mxu1 %v1279_v56  ;;  %2548 = vmatprep.mubr.msk.bf16.mxu1 %vm2853_vm0, %v2852_v0  ;;  %v595_v24 = vcombine.low %v570_v20, %v574_v21  ;;  %v596_v30 = vcombine.high %v570_v20, %v574_v21 }
 0x347   : > { %2558 = vmatprep.subr.bf16.mxu1 %v2852_v0 }
 0x348   : > { %v603_v26 = vrot.slane %v595_v24, %v3121_v23  ;;  %v610_v33 = vrot.slane %v596_v30, %v3121_v23 }
 0x34a   : > { %v611_v29 = vcombine.low %v587_v27, %v603_v26  ;;  %v612_v36 = vcombine.high %v587_v27, %v603_v26  ;;  %v627_v40 = vcombine.low %v594_v37, %v610_v33  ;;  %v628_v44 = vcombine.high %v594_v37, %v610_v33 }
 0x34c   : > { %v619_v31 = vrot.slane %v611_v29, %v3127_v35  ;;  %v626_v39 = vrot.slane %v612_v36, %v3127_v35  ;;  %v635_v43 = vrot.slane %v627_v40, %v3127_v35  ;;  %v642_v46 = vrot.slane %v628_v44, %v3127_v35 }
 0x34d   : > { %2549 = vmatmul.mubr.msk.bf16.vlgmr.msra.gmra.mrb[8].mxu1 %vm1135_vm3, %v716_v57 }
 0x34e   : > { %2560 = vmatprep.mubr.msk.bf16.mxu1 %vm2853_vm0, %v2852_v0  ;;  %v643_v34 = vcombine.high %v619_v31, %v2852_v0  ;;  %v647_v41 = vpack.c.bf16 %v619_v31, %v619_v31  ;;  %v649_v42 = vpack.c.bf16 %v626_v39, %v626_v39  ;;  %v651_v45 = vpack.c.bf16 %v635_v43, %v635_v43 }
 0x34f   : > { %v653_v47 = vpack.c.bf16 %v642_v46, %v642_v46  ;;  %v644_v50 = vcombine.high %v626_v39, %v2852_v0  ;;  %v645_v52 = vcombine.high %v635_v43, %v2852_v0  ;;  %v646_v54 = vcombine.high %v642_v46, %v2852_v0 }
 0x350   : > { %v648_v38 = vpack.c.bf16 %v643_v34, %v643_v34 }
 0x351   : > { %v650_v51 = vpack.c.bf16 %v644_v50, %v644_v50  ;;  %v652_v53 = vpack.c.bf16 %v645_v52, %v645_v52  ;;  %v654_v55 = vpack.c.bf16 %v646_v54, %v646_v54 }
 0x410   : > { %v1177_v11 = vpop.f32.mrb[0].mxu1 }
 0x411   : > { %v3209_v12 = vmul.f32 0.35355338, %v1177_v11  ;;  %v2532_v58 = vpop.f32.mrb[1].mxu1 }
 0x412   : > { %v1180_v59 = vpop.f32.mrb[2].mxu1  ;;  %v1269_v60 = vpop.f32.mrb[4].mxu0 }
 0x413   : > { %v3211_v61 = vmul.f32 0.35355338, %v1269_v60  ;;  %v2533_v62 = vpop.f32.mrb[3].mxu1  ;;  %v2544_v63 = vpop.f32.mrb[5].mxu0  ;;  %v1325_v1 = vsel %vm1135_vm3, %v3209_v12, -inf }
 0x414   : > { %1326 = vmax.xlane.f32.xlu0 %v1325_v1  ;;  %v1272_v2 = vpop.f32.mrb[6].mxu0 }
 0x415   : > { %v2545_v3 = vpop.f32.mrb[7].mxu0  ;;  %v1331_v4 = vsel %vm1135_vm3, %v3211_v61, -inf }
 0x418   : > { %v1223_v5 = vpop.f32.mrb[4].mxu1  ;;  %1332 = vmax.xlane.f32.xlu0 %v1331_v4 }
 0x419   : > { %v3217_v6 = vmul.f32 0.35355338, %v1223_v5  ;;  %v2538_v8 = vpop.f32.mrb[5].mxu1 }
 0x41a   : > { %v1226_v9 = vpop.f32.mrb[6].mxu1 }
 0x41b   : > { %v2539_v10 = vpop.f32.mrb[7].mxu1  ;;  %v1328_v14 = vsel %vm1135_vm3, %v3217_v6, -inf }
 0x41c   : > { %1329 = vmax.xlane.f32.xlu1 %v1328_v14 }
 0x420   : > { %v1315_v15 = vpop.f32.mrb[8].mxu1 }
 0x421   : > { %v2550_v16 = vpop.f32.mrb[9].mxu1  ;;  %v3230_v48 = vmul.f32 0.35355338, %v1315_v15 }
 0x422   : > { %v1318_v17 = vpop.f32.mrb[10].mxu1 }
 0x423   : > { %v2551_v18 = vpop.f32.mrb[11].mxu1  ;;  %v1334_v49 = vsel %vm1135_vm3, %v3230_v48, -inf }
 0x445   : > { %1389 = vxpose.xlu0.c.b16.start.end [1/1] (short) (narrow) %v648_v38, 16 }
 0x449   : > { %1373 = vxpose.xlu1.c.b16.start.end [1/1] (short) (narrow) %v647_v41, 16  ;;  %1405 = vxpose.xlu0.c.b16.start.end [1/1] (short) (narrow) %v649_v42, 16 }
 0x44d   : > { %1437 = vxpose.xlu0.c.b16.start.end [1/1] (short) (narrow) %v651_v45, 16 }
 0x451   : > { %1469 = vxpose.xlu0.c.b16.start.end [1/1] (short) (narrow) %v653_v47, 16 }
 0x456   : > { %1335 = vmax.xlane.f32.xlu1 %v1334_v49 }
 0x483   : > { %1421 = vxpose.xlu1.c.b16.start.end [1/1] (short) (narrow) %v650_v51, 16 }
 0x487   : > { %1453 = vxpose.xlu1.c.b16.start.end [1/1] (short) (narrow) %v652_v53, 16 }
 0x48b   : > { %1485 = vxpose.xlu1.c.b16.start.end [1/1] (short) (narrow) %v654_v55, 16 }
 0x4a1   : > { %v1327_v56 = vpop.xlane.xlu0 %1326 }
 0x4a2   : > { %v1337_v29 = vsub.f32 %v3209_v12, %v1327_v56 }
 0x4a4   : > { %v1341_v38 = vmul.f32 1.442695, %v1337_v29 }
 0x4a5   : > { %v1333_v7 = vpop.xlane.xlu0 %1332 }
 0x4a6   : > { %v1339_v39 = vsub.f32 %v3211_v61, %v1333_v7  ;;  %2670 = vpow2.f32 %v1341_v38 }
 0x4a8   : > { %v1345_v45 = vmul.f32 1.442695, %v1339_v39 }
 0x4a9   : > { %v1330_v11 = vpop.xlane.xlu1 %1329 }
 0x4aa   : > { %v1338_v33 = vsub.f32 %v3217_v6, %v1330_v11 }
 0x4ab   : > { %v1397_v13 = vpop.trf.xlu0 }
 0x4ac   : > { %v1343_v42 = vmul.f32 1.442695, %v1338_v33 }
 0x4ae   : > { %2672 = vpow2.f32 %v1343_v42 }
 0x4af   : > { %v1413_v57 = vpop.trf.xlu0  ;;  %v1381_v58 = vpop.trf.xlu1  ;;  %2674 = vpow2.f32 %v1345_v45 }
 0x4b0   : > { %v2671_v47 = vpop.eup %2670 }
 0x4b1   : > { %v1349_v49 = vsel %vm1135_vm3, %v2671_v47, 0.0 }
 0x4b3   : > { %v1445_v59 = vpop.trf.xlu0 }
 0x4b4   : > { %v1501_v63 = vcombine.low %v1381_v58, %v1445_v59 }
 0x4b6   : > { %v1508_v3 = vrot.slane %v1501_v63, %v3121_v23 }
 0x4b7   : > { %v1477_v62 = vpop.trf.xlu0 }
 0x4b8   : > { %v1509_v1 = vcombine.low %v1413_v57, %v1477_v62  ;;  %v2673_v61 = vpop.eup %2672 }
 0x4b9   : > { %v2675_v50 = vpop.eup %2674 }
 0x4ba   : > { %v1516_v4 = vrot.slane %v1509_v1, %v3121_v23  ;;  %v1355_v52 = vsel %vm1135_vm3, %v2675_v50, 0.0 }
 0x4bc   : > { %v1517_v9 = vcombine.low %v1508_v3, %v1516_v4  ;;  %v1518_v21 = vcombine.high %v1508_v3, %v1516_v4 }
 0x4be   : > { %v1525_v17 = vrot.slane %v1517_v9, %v3127_v35  ;;  %v1532_v37 = vrot.slane %v1518_v21, %v3127_v35 }
 0x4c0   : > { %v1573_v22 = vshrl.u32 %v1525_v17, 16  ;;  %v1533_v26 = vcombine.high %v1525_v17, %v2860_v28  ;;  %v1589_v44 = vshrl.u32 %v1532_v37, 16  ;;  %v1534_v55 = vcombine.high %v1532_v37, %v2860_v28 }
 0x4c2   : > { %v1581_v36 = vshrl.u32 %v1533_v26, 16 }
 0x4e3   : > { %v1336_v60 = vpop.xlane.xlu1 %1335 }
 0x4e4   : > { %v1340_v12 = vsub.f32 %v3230_v48, %v1336_v60  ;;  %v1352_v48 = vsel %vm1135_vm3, %v2673_v61, 0.0 }
 0x4e6   : > { %v1347_v46 = vmul.f32 1.442695, %v1340_v12 }
 0x4e8   : > { %2676 = vpow2.f32 %v1347_v46 }
 0x4e9   : > { %v1429_v2 = vpop.trf.xlu1 }
 0x4ed   : > { %v1461_v5 = vpop.trf.xlu1 }
 0x4ee   : > { %v1535_v8 = vcombine.low %v1397_v13, %v1461_v5  ;;  %v1597_v13 = vshrl.u32 %v1534_v55, 16 }
 0x4f0   : > { %v1542_v15 = vrot.slane %v1535_v8, %v3121_v23 }
 0x4f1   : > { %v1493_v10 = vpop.trf.xlu1 }
 0x4f2   : > { %v1543_v14 = vcombine.low %v1429_v2, %v1493_v10  ;;  %v2677_v51 = vpop.eup %2676 }
 0x4f3   : > { %v1358_v53 = vsel %vm1135_vm3, %v2677_v51, 0.0 }
 0x4f4   : > { %v1550_v16 = vrot.slane %v1543_v14, %v3121_v23 }
 0x4f6   : > { %v1551_v18 = vcombine.low %v1542_v15, %v1550_v16  ;;  %v1552_v19 = vcombine.high %v1542_v15, %v1550_v16 }
 0x4f8   : > { %v1559_v20 = vrot.slane %v1551_v18, %v3127_v35  ;;  %v1566_v32 = vrot.slane %v1552_v19, %v3127_v35 }
 0x4fa   : > { %v1571_v24 = vpack.i.b16 %v1559_v20, %v1525_v17  ;;  %v1574_v25 = vshrl.u32 %v1559_v20, 16  ;;  %v1567_v27 = vcombine.high %v1559_v20, %v2860_v28  ;;  %v1590_v41 = vshrl.u32 %v1566_v32, 16 }
 0x4fb   : > { %v1587_v43 = vpack.i.b16 %v1566_v32, %v1532_v37  ;;  %v1568_v54 = vcombine.high %v1566_v32, %v2860_v28 }
 0x4fc   : > { %1601 = vxpose.xlu0.c.b16.start.end [1/1] (short) (narrow) %v1571_v24, 16  ;;  %v1575_v30 = vpack.i.b16 %v1574_v25, %v1573_v22  ;;  %v1582_v31 = vshrl.u32 %v1567_v27, 16  ;;  %v1579_v34 = vpack.i.b16 %v1567_v27, %v1533_v26  ;;  %v1591_v6 = vpack.i.b16 %v1590_v41, %v1589_v44 }
 0x4fd   : > { %v1598_v56 = vshrl.u32 %v1568_v54, 16  ;;  %v1595_v7 = vpack.i.b16 %v1568_v54, %v1534_v55 }
 0x4fe   : > { %1617 = vxpose.xlu1.c.b16.start.end [1/1] (short) (narrow) %v1575_v30, 16  ;;  %v1583_v40 = vpack.i.b16 %v1582_v31, %v1581_v36 }
 0x4ff   : > { %v1599_v57 = vpack.i.b16 %v1598_v56, %v1597_v13 }
 0x500   : > { %1633 = vxpose.xlu0.c.b16.start.end [1/1] (short) (narrow) %v1579_v34, 16 }
 0x502   : > { %1649 = vxpose.xlu1.c.b16.start.end [1/1] (short) (narrow) %v1583_v40, 16 }
 0x504   : > { %1665 = vxpose.xlu0.c.b16.start.end [1/1] (short) (narrow) %v1587_v43, 16 }
 0x506   : > { %1681 = vxpose.xlu1.c.b16.start.end [1/1] (short) (narrow) %v1591_v6, 16 }
 0x511   : > { %1350 = vadd.xlane.f32.xlu0 %v1349_v49 }
 0x513   : > { %1353 = vadd.xlane.f32.xlu1 %v1352_v48 }
 0x515   : > { %1356 = vadd.xlane.f32.xlu0 %v1355_v52 }
 0x517   : > { %1359 = vadd.xlane.f32.xlu1 %v1358_v53 }
 0x542   : > { %1697 = vxpose.xlu0.c.b16.start.end [1/1] (short) (narrow) %v1595_v7, 16 }
 0x544   : > { %1713 = vxpose.xlu1.c.b16.start.end [1/1] (short) (narrow) %v1599_v57, 16 }
 0x562   : > { %v1609_v11 = vpop.trf.xlu0 }
 0x564   : > { %v1625_v58 = vpop.trf.xlu1 }
 0x566   : > { %v1641_v59 = vpop.trf.xlu0 }
 0x568   : > { %v1657_v60 = vpop.trf.xlu1 }
 0x56a   : > { %v1673_v62 = vpop.trf.xlu0 }
 0x56b   : > { %v1729_v5 = vcombine.low %v1609_v11, %v1673_v62 }
 0x56c   : > { %v1689_v63 = vpop.trf.xlu1 }
 0x56d   : > { %v1754_v10 = vcombine.low %v1625_v58, %v1689_v63  ;;  %v1736_v18 = vrot.slane %v1729_v5, %v3121_v23 }
 0x56f   : > { %v1761_v25 = vrot.slane %v1754_v10, %v3121_v23 }
 0x59e   : > { %v1351_v1 = vpop.xlane.xlu0 %1350 }
 0x59f   : > { %2678 = vrcp.f32 %v1351_v1 }
 0x5a0   : > { %v1354_v2 = vpop.xlane.xlu1 %1353 }
 0x5a1   : > { %2680 = vrcp.f32 %v1354_v2 }
 0x5a2   : > { %v1357_v3 = vpop.xlane.xlu0 %1356 }
 0x5a3   : > { %2682 = vrcp.f32 %v1357_v3 }
 0x5a4   : > { %v1360_v4 = vpop.xlane.xlu1 %1359 }
 0x5a5   : > { %2684 = vrcp.f32 %v1360_v4 }
 0x5a8   : > { %v1705_v8 = vpop.trf.xlu0 }
 0x5a9   : > { %v2679_v9 = vpop.eup %2678  ;;  %v1737_v14 = vcombine.low %v1641_v59, %v1705_v8 }
 0x5aa   : > { %v1721_v15 = vpop.trf.xlu1  ;;  %v1365_v16 = vmul.f32 %v2679_v9, %v2671_v47 }
 0x5ab   : > { %v2681_v17 = vpop.eup %2680  ;;  %v1744_v19 = vrot.slane %v1737_v14, %v3121_v23  ;;  %v1762_v20 = vcombine.low %v1657_v60, %v1721_v15 }
 0x5ac   : > { %v1369_v21 = vpack.c.bf16 %v1365_v16, %v1365_v16  ;;  %v1366_v22 = vmul.f32 %v2681_v17, %v2673_v61 }
 0x5ad   : > { %v2683_v24 = vpop.eup %2682  ;;  %v1745_v26 = vcombine.low %v1736_v18, %v1744_v19  ;;  %v1769_v27 = vrot.slane %v1762_v20, %v3121_v23 }
 0x5ae   : > { %v1795_v29 = vsel %vm1135_vm3, %v1369_v21, 0  ;;  %v1370_v30 = vpack.c.bf16 %v1366_v22, %v1366_v22  ;;  %v1367_v31 = vmul.f32 %v2683_v24, %v2675_v50  ;;  %v2668_v21 = vld [vmem:[#allocation7] sm:$0xff]  }
 0x5af   : > { %v2685_v32 = vpop.eup %2684  ;;  %v1752_v33 = vrot.slane %v1745_v26, %v3127_v35  ;;  %v1770_v34 = vcombine.low %v1761_v25, %v1769_v27  ;;  %2553 = vmatpush3.bf16.xpose.msra.mxu0 %v1795_v29 }
 0x5b0   : > { %v1841_v36 = vsel %vm1135_vm3, %v1370_v30, 0  ;;  %2564 = vmatprep.subr.bf16.mxu0 %v2852_v0  ;;  %v1368_v37 = vmul.f32 %v2685_v32, %v2677_v51  ;;  %v1371_v39 = vpack.c.bf16 %v1367_v31, %v1367_v31  ;;  %v2669_v32 = vld [vmem:[#allocation7 + $0x8] sm:$0xff]  }
 0x5b1   : > { %v1777_v38 = vrot.slane %v1770_v34, %v3127_v35  ;;  %2559 = vmatpush3.bf16.xpose.msra.mxu1 %v1841_v36  ;;  %v1782_v40 = vshrl.u32 %v1752_v33, 16  ;;  %v1753_v6 = vcombine.high %v1752_v33, %v2860_v28 }
 0x5b2   : > { %2570 = vmatprep.subr.bf16.mxu1 %v2852_v0  ;;  %v1372_v12 = vpack.c.bf16 %v1368_v37, %v1368_v37  ;;  %v1887_v45 = vsel %vm1135_vm3, %v1371_v39, 0 }
 0x5b3   : > { %v1781_v41 = vpack.i.b16 %v1777_v38, %v1752_v33  ;;  %v1783_v42 = vshrl.u32 %v1777_v38, 16  ;;  %v1778_v44 = vcombine.high %v1777_v38, %v2860_v28  ;;  %v1788_v61 = vshrl.u32 %v1753_v6, 16 }
 0x5b4   : > { %v1933_v46 = vsel %vm1135_vm3, %v1372_v12, 0 }
 0x5b5   : > { %v1784_v43 = vpack.i.b16 %v1783_v42, %v1782_v40  ;;  %v1789_v47 = vshrl.u32 %v1778_v44, 16  ;;  %v1787_v49 = vpack.i.b16 %v1778_v44, %v1753_v6 }
 0x5b6   : > { %2555 = vmatmul.mubr.msk.bf16.vlgmr.msra.gmra.mrb[8].mxu0 %vm1135_vm3, %v1781_v41 }
 0x5b7   : > { %2565 = vmatpush3.bf16.xpose.msra.mxu0 %v1887_v45  ;;  %2566 = vmatprep.mubr.msk.bf16.mxu0 %vm2853_vm0, %v2852_v0  ;;  %v1790_v50 = vpack.i.b16 %v1789_v47, %v1788_v61 }
 0x5b8   : > { %2561 = vmatmul.mubr.msk.bf16.vlgmr.msra.gmra.mrb[12].mxu1 %vm1135_vm3, %v1784_v43  ;;  %2576 = vmatprep.subr.bf16.mxu0 %v2852_v0 }
 0x5b9   : > { %2571 = vmatpush3.bf16.xpose.msra.mxu1 %v1933_v46  ;;  %2572 = vmatprep.mubr.msk.bf16.mxu1 %vm2853_vm0, %v2852_v0 }
 0x5be   : > { %2567 = vmatmul.mubr.msk.bf16.vlgmr.msra.gmra.mrb[12].mxu0 %vm1135_vm3, %v1787_v49 }
 0x5bf   : > { %2580 = vmatprep.mubr.msk.bf16.mxu0 %vm2853_vm0, %v2852_v0  ;;  %2577 = vmatpush3.bf16.msra.mxu0 %v2668_v21 }
 0x5c0   : > { %2573 = vmatmul.mubr.msk.bf16.vlgmr.msra.gmra.mrb[16].mxu1 %vm1135_vm3, %v1790_v50  ;;  %2578 = vmatprep.subr.bf16.mxu0 %v2852_v0 }
 0x5c3   : > { %2579 = vmatpush3.bf16.msra.mxu0 %v2669_v32 }
 0x689   : > { %v1831_v28 = vpop.f32.mrb[8].mxu0 }
 0x68a   : > { %1975 = vxpose.xlu0.b32.start.end [1/1] (short) (narrow) %v1831_v28, 8  ;;  %v2556_v48 = vpop.f32.mrb[9].mxu0 }
 0x68b   : > { %v1834_v51 = vpop.f32.mrb[10].mxu0  ;;  %v1877_v52 = vpop.f32.mrb[12].mxu1  ;;  %v2488_v48 = vld [vmem:[%s3368_s4] ss:$0 sm:$0xff] }
 0x68c   : > { %2007 = vxpose.xlu1.b32.start.end [1/1] (short) (narrow) %v1877_v52, 8  ;;  %v2557_v53 = vpop.f32.mrb[11].mxu0  ;;  %v2562_v54 = vpop.f32.mrb[13].mxu1 }
 0x68d   : > { %v1880_v55 = vpop.f32.mrb[14].mxu1 }
 0x68e   : > { %v2563_v56 = vpop.f32.mrb[15].mxu1 }
 0x68f   : > { %v2688_v56 = vld [vmem:[%s3081_s29] sm:$0xff]  ;;  %s2781_s29 = scalar_lea.vmem %s2780_s14, 256 }
 0x690   : > { %p2783_p9 = scmp.lt.s32.totalorder %s2781_s29, %s2775_s30 }
 0x691   : > { %v1923_v7 = vpop.f32.mrb[12].mxu0 }
 0x692   : > { %2039 = vxpose.xlu0.b32.start.end [1/1] (short) (narrow) %v1923_v7, 8  ;;  %v2568_v13 = vpop.f32.mrb[13].mxu0  ;;  %p2784_p12 = por %p2783_p9, %p2782_p7 }
 0x693   : > { %v1926_v57 = vpop.f32.mrb[14].mxu0  ;;  %v1969_v11 = vpop.f32.mrb[16].mxu1 }
 0x694   : > { %v2569_v58 = vpop.f32.mrb[15].mxu0  ;;  %v2574_v59 = vpop.f32.mrb[17].mxu1  ;;  %p2785_p2 = pnand %p2784_p12, %p2778_p3 }
 0x695   : > { %v1972_v60 = vpop.f32.mrb[18].mxu1 }
 0x696   : > { %v2575_v62 = vpop.f32.mrb[19].mxu1  ;;  %2071 = vxpose.xlu0.b32.start.end [1/1] (short) (narrow) %v1969_v11, 8 }
 0x70a   : > { %v1991_v63 = vpop.trf.xlu0 }
 0x70c   : > { %v2023_v2 = vpop.trf.xlu1 }
 0x712   : > { %v2055_v1 = vpop.trf.xlu0 }
 0x713   : > { %v2103_v3 = vcombine.low %v1991_v63, %v2055_v1  ;;  %v2104_v4 = vcombine.high %v1991_v63, %v2055_v1 }
 0x715   : > { %v2111_v10 = vrot.slane %v2103_v3, %v3121_v23  ;;  %v2118_v14 = vrot.slane %v2104_v4, %v3121_v23  ;;  %v2492_v3 = vld [vmem:[%s3369_s5] ss:$0 sm:$0xff] }
 0x716   : > { %v2087_v5 = vpop.trf.xlu0 }
 0x717   : > { %v2119_v8 = vcombine.low %v2023_v2, %v2087_v5  ;;  %v2120_v9 = vcombine.high %v2023_v2, %v2087_v5  ;;  %v2493_v5 = vld [vmem:[%s3370_s6] ss:$0 sm:$0xff] }
 0x719   : > { %v2127_v15 = vrot.slane %v2119_v8, %v3121_v23  ;;  %v2134_v16 = vrot.slane %v2120_v9, %v3121_v23 }
 0x71b   : > { %v2135_v17 = vcombine.low %v2111_v10, %v2127_v15  ;;  %v2136_v18 = vcombine.high %v2111_v10, %v2127_v15  ;;  %v2151_v19 = vcombine.low %v2118_v14, %v2134_v16  ;;  %v2152_v20 = vcombine.high %v2118_v14, %v2134_v16 }
 0x71d   : > { %v2143_v22 = vrot.slane %v2135_v17, %v3127_v35  ;;  %v2150_v24 = vrot.slane %v2136_v18, %v3127_v35  ;;  %v2159_v25 = vrot.slane %v2151_v19, %v3127_v35  ;;  %v2166_v26 = vrot.slane %v2152_v20, %v3127_v35 }
 0x71f   : > { %v2171_v27 = vcombine.low %v2143_v22, %v2150_v24  ;;  %v2486_v29 = vcombine.high %v2143_v22, %v2150_v24  ;;  %v2187_v30 = vcombine.low %v2159_v25, %v2166_v26  ;;  %v2487_v31 = vcombine.high %v2159_v25, %v2166_v26 }
 0x721   : > { %v2178_v33 = vrot.slane %v2171_v27, %v3121_v23  ;;  %v2186_v34 = vrot.slane %v2486_v29, %v3121_v23  ;;  %v2194_v36 = vrot.slane %v2187_v30, %v3121_v23  ;;  %v2202_v37 = vrot.slane %v2487_v31, %v3121_v23 }
 0x723   : > { %v2204_v38 = vcombine.high %v2178_v33, %v2186_v34  ;;  %v2220_v39 = vcombine.high %v2194_v36, %v2202_v37  ;;  %v2203_v40 = vcombine.low %v2178_v33, %v2186_v34  ;;  %v2219_v41 = vcombine.low %v2194_v36, %v2202_v37 }
 0x725   : > { %v2218_v42 = vrot.slane %v2204_v38, %v3127_v35  ;;  %v2234_v12 = vrot.slane %v2220_v39, %v3127_v35  ;;  %v2211_v0 = vrot.slane %v2203_v40, %v3127_v35  ;;  %v2227_v43 = vrot.slane %v2219_v41, %v3127_v35 }
 0x727   : > { %v2237_v44 = vcombine.low %v2218_v42, %v2234_v12  ;;  %v2236_v45 = vcombine.high %v2211_v0, %v2227_v43  ;;  %v2235_v6 = vcombine.low %v2211_v0, %v2227_v43  ;;  %v2238_v23 = vcombine.high %v2218_v42, %v2234_v12 }
 0x729   : > { %2244 = vrot.lane.b32.xlu0 %v2237_v44, %s2862_s21  ;;  %2240 = vrot.lane.b32.xlu1 %v2236_v45, %s2863_s15 }
 0x72d   : > { %2248 = vrot.lane.b32.xlu1 %v2238_v23, %s2864_s19  ;;  %s3319_s19 = scalar_lea.hbm %s3371_s7, %s2495_s22 }
 0x79b   : > { %v2241_v46 = vpop.permute.xlu1 %2240  ;;  %v2245_v47 = vpop.permute.xlu0 %2244 }
 0x79c   : > { %v2251_v61 = vsel %vm1135_vm3, %v2235_v6, %v2241_v46 }
 0x79d   : > { %v2253_v50 = vsel %vm2252_vm4, %v2251_v61, %v2245_v47 }
 0x79f   : > { %v2249_v49 = vpop.permute.xlu1 %2248 }
 0x7a0   : > { %v2255_v35 = vsel %vm2254_vm5, %v2253_v50, %v2249_v49 }
 0x7a1   : > { %v2256_v28 = vpack.c.bf16 %v2255_v35, %v2255_v35 }
 0x7a3   : > { %2581 = vmatmul.mubr.msk.bf16.vlgmr.msra.gmra.mrb[16].mxu0 %vm349_vm1, %v2256_v28 }
 0x876   : > { %v2317_v51 = vpop.f32.mrb[16].mxu0 }
 0x877   : > { %v2318_v52 = vadd.f32 %v2488_v48, %v2317_v51  ;;  %v2582_v53 = vpop.f32.mrb[17].mxu0 }
 0x878   : > { %v2320_v54 = vpop.f32.mrb[18].mxu0 }
 0x879   : > { %v2583_v55 = vpop.f32.mrb[19].mxu0  ;;  %v2323_v7 = vadd.f32 %v2688_v56, %v2318_v52 }
 0x87b   : > { %v2324_v13 = vsel %vm349_vm1, %v2323_v7, 0.0 }
 0x87c   : > { %2325 = vadd.xlane.f32.xlu1 %v2324_v13 }
 0x909   : > { %v2326_v57 = vpop.xlane.xlu1 %2325 }
 0x90a   : > { %v2328_v11 = vmul.f32 0.03125, %v2326_v57 }
 0x90c   : > { %v2329_v58 = vsub.f32 %v2323_v7, %v2328_v11 }
 0x90e   : > { %v2330_v59 = vmul.f32 %v2329_v58, %v2329_v58 }
 0x910   : > { %v2331_v60 = vsel %vm349_vm1, %v2330_v59, 0.0 }
 0x911   : > { %2332 = vadd.xlane.f32.xlu0 %v2331_v60 }
 0x99e   : > { %v2333_v62 = vpop.xlane.xlu0 %2332 }
 0x99f   : > { %v2334_v63 = vmul.f32 0.03125, %v2333_v62 }
 0x9a1   : > { %v2335_v1 = vadd.f32 1e-05, %v2334_v63 }
 0x9a3   : > { %2686 = vrsqrt.f32 %v2335_v1 }
 0x9ad   : > { %v2687_v2 = vpop.eup %2686 }
 0x9ae   : > { %v2337_v4 = vmul.f32 %v2687_v2, %v2329_v58 }
 0x9b0   : > { %v2345_v8 = vmul.f32 %v2492_v3, %v2337_v4 }
 0x9b2   : > { %v2353_v9 = vadd.f32 %v2493_v5, %v2345_v8 }
 0x9b4   : > { %2354 = vst.msk [vmem:[%s322_s10] sm:$0xff] %vm349_vm1, %v2353_v9 }
 0x9b5   : > { %2788 = shalt.err (!%p2785_p2)
}
 0x9b6   : > { %s2789_s12 = scalar_lea.hbm %s3319_s19, 128  ;;  %s2793_s11 = scalar_lea.hbm %s3371_s7, 256 }
 0x9b7   : > { %p2790_p13 = scmp.ne.s32.totalorder %s3319_s19, %s2789_s12  ;;  %p2794_p4 = scmp.lt.u32.totalorder %s3319_s19, %s3371_s7 }
 0x9b8   : > { %p2795_p5 = scmp.lt.u32.totalorder %s2793_s11, %s2789_s12  ;;  %p2797_p11 = scmp.lt.u32.totalorder %s2789_s12, %s3319_s19 }
 0x9b9   : > { %p2791_p6 = pnand %p2790_p13, %p3385_p0 }
 0x9ba   : > { %p2796_p8 = por %p2795_p5, %p2794_p4 }
 0x9bb   : > { %p2792_p10 = pneg %p2791_p6 }
 0x9bc   : > { %p2798_p1 = por %p2797_p11, %p2796_p8 }
 0x9be   : > { %p2799_p3 = pnand %p2798_p1, %p2792_p10 }
 0x9c0   : > { %2802 = shalt.err (!%p2799_p3)
}
 0x9c1   : > { %2594 = dma.vmem_to_hbm [thread:$0]  (%p3385_p0), %s3321_s18, 128, %s3319_s19, %s2356_s23  }
 0x9c2 PF: > { %s2381_s21 = sand.u32 1, %s2833_s24   ;;  %p3386_p7 = scmp.ne.s32.totalorder %s3376_s8, 0 }
 0x9c3   : > { %p3387_p9 = scmp.ge.s32.totalorder %s2845_s27, 2  ;;  %s2382_s15 = scalar_lea.sflag [#allocation4], %s2381_s21 }
 0x9c5   : > { %p2608_p12 = pnand %p3387_p9, %p3386_p7 }
 0x9c7   : > { %2828 = dma.done.wait (!%p2608_p12), %s2382_s15, 128  }
 0x9c8   : > { %2830 = vsyncadd (!%p2608_p12), %s2382_s15, 4294967168  ;;  %p21_p2 = scmp.ge.s32.totalorder %s3016_s13, 4   ;;  %s3388_s24 = smov %s2837_s25 }
 0x9c9   : > { %s3389_s25 = smov %s2841_s26  ;;  %s3390_s26 = smov %s3032_s17 }
 0x9ca   : > { %s3391_s27 = smov %s3016_s13  ;;  %23 = sbr.rel (!%p21_p2) target bundleno = 6 (0x6), region = 101 }
 0x9d1   :  { %2387 = vsyncpa [#allocation3], 1 }
 0x9d2   :  { %2389 = vsyncpa [#allocation3 + $0x1], 1 }
 0x9d3   :  { %2390 = vsyncpa [#allocation6], 1 }
 0x9d4   :  { %2391 = vsyncpa [#allocation4], 1 }
 0x9d5   :  { %2393 = vsyncpa [#allocation4 + $0x1], 1 }

</bundles_post_ra>
